<compile_context>
chip_gen: v7x
topology: tpu7x:2x2x1
jax: 0.10.0
libtpu: 0.0.40
codegen_flags: <defaults>
</compile_context>

<pallas_src>
import jax
import jax.numpy as jnp
from jax.experimental import pallas as pl
from jax.experimental.pallas import tpu as pltpu


def _round_up(x, m):
    return (x + m - 1) // m * m


# ----------------------------- Pallas kernel ------------------------------ #
def _proj_kernel(p_ref, w_ref, b_ref, o_ref):
    # p_ref: (TM, K)  bf16 patch rows (flattened batch*token axis)
    # w_ref: (K, D)   bf16 projection weight, pre-permuted to (dy, dx, c) order
    # b_ref: (1, D)   f32 bias
    # o_ref: (TM, D)  output rows
    acc = jnp.dot(p_ref[...], w_ref[...], preferred_element_type=jnp.float32)
    o_ref[...] = (acc + b_ref[...]).astype(o_ref.dtype)


def _proj_pallas(patches_flat, w_proj, b_proj, out_dtype, tile_m=1024):
    """patches_flat: [M, K] bf16; w_proj: [K, D] bf16; b_proj: [1, D] f32."""
    M, K = patches_flat.shape
    D = w_proj.shape[1]

    # Pick the M tile: large (amortize per-step overhead), 16-aligned for bf16
    # sublane packing, and capped so the parallel grid axis has >= 2 steps
    # (v7x megacore).  Tiny M falls back to a single full block.
    if M <= 16:
        TM = M
    else:
        TM = min(tile_m, _round_up(M, 16))
        TM = min(TM, _round_up(pl.cdiv(M, 2), 16))
    grid_m = pl.cdiv(M, TM)  # ragged last block: Pallas masks its writeback

    # Scoped-VMEM request: double-buffered streamed blocks + resident weight/
    # bias, with slack; capped at 32 MiB (fits every generation incl. v7x).
    out_bytes = jnp.dtype(out_dtype).itemsize
    vmem_bytes = 2 * (TM * K * 2 + TM * D * out_bytes) + 2 * (K * D * 2 + D * 4)
    vmem_limit = int(min(max(vmem_bytes + (1 << 20), 4 << 20), 32 << 20))

    return pl.pallas_call(
        _proj_kernel,
        out_shape=jax.ShapeDtypeStruct((M, D), out_dtype),
        grid_spec=pltpu.PrefetchScalarGridSpec(
            num_scalar_prefetch=0,
            grid=(grid_m,),
            in_specs=[
                pl.BlockSpec((TM, K), lambda i: (i, 0)),
                pl.BlockSpec((K, D), lambda i: (0, 0)),   # resident weight
                pl.BlockSpec((1, D), lambda i: (0, 0)),   # resident bias
            ],
            out_specs=pl.BlockSpec((TM, D), lambda i: (i, 0)),
        ),
        compiler_params=pltpu.CompilerParams(
            dimension_semantics=("parallel",),
            vmem_limit_bytes=vmem_limit,
        ),
    )(patches_flat, w_proj, b_proj)


# --------------------------- module (JAX glue) ----------------------------- #
def random_sampling(key, B, H, W, patch_size, N_vis):
    ky, kx = jax.random.split(key)
    ys = jax.random.randint(ky, (B, N_vis), 0, H - patch_size + 1, dtype=jnp.int32)
    xs = jax.random.randint(kx, (B, N_vis), 0, W - patch_size + 1, dtype=jnp.int32)
    return ys, xs


def init_off_grid_patch_embed(key, patch_size=4, in_chans=3, embed_dim=32):
    """nn.Linear(P*P*C, D) init + kernel-ready (permuted, bf16) weight."""
    K = patch_size * patch_size * in_chans
    kw, kb = jax.random.split(key)
    bound = 1.0 / float(K) ** 0.5
    # PyTorch stores weight as [D, K] with K ordered (c, dy, dx).
    weight = jax.random.uniform(kw, (embed_dim, K), jnp.float32, -bound, bound)
    bias = jax.random.uniform(kb, (embed_dim,), jnp.float32, -bound, bound)

    # Precompute once: permute the static weight so the kernel consumes
    # channels-last patches ordered (dy, dx, c); stream it as bf16.
    # No 128-lane padding — the kernel writes the output at its true width D.
    w_perm = (
        weight.T.reshape(in_chans, patch_size * patch_size, embed_dim)
        .transpose(1, 0, 2)                                   # row = p*C + c
        .reshape(K, embed_dim)
    )
    w_proj = w_perm.astype(jnp.bfloat16)                      # [K, D]
    b_proj = bias.reshape(1, embed_dim).astype(jnp.float32)   # [1, D]

    return {
        "weight": weight, "bias": bias,
        "w_proj": w_proj, "b_proj": b_proj,
        "patch_size": patch_size, "in_chans": in_chans, "embed_dim": embed_dim,
    }


def off_grid_patch_embed_forward(params, x, sampler_key, mask_ratio=0.0):
    """x: [B, C, H, W] -> (tokens [B, N_vis, D], positions [B, N_vis, 2])."""
    B, C, H, W = x.shape
    P = params["patch_size"]
    D = params["embed_dim"]
    N = (H // P) * (W // P)
    N_vis = int(N * (1.0 - mask_ratio))

    ys, xs = random_sampling(sampler_key, B, H, W, P, N_vis)     # [B, N_vis]
    patch_positions = jnp.stack([ys, xs], axis=-1)               # [B, N_vis, 2]

    # ---- off-grid gather: channels-last, one index per pixel ----
    # Patch features come out ordered (dy, dx, c); the matching permutation
    # lives on the static weight (see init), so no activation transpose.
    # bf16 cast fuses into the single NCHW->NHWC pass.
    dy = jnp.arange(P, dtype=jnp.int32)[:, None]
    dx = jnp.arange(P, dtype=jnp.int32)[None, :]
    d = (dy * W + dx).reshape(-1)                                # [P*P], p = dy*P+dx
    pix_idx = ((ys * W + xs)[..., None] + d[None, None, :]).reshape(
        B, N_vis * P * P
    )                                                            # per-pixel indices

    x_pix = (
        jnp.transpose(x, (0, 2, 3, 1)).astype(jnp.bfloat16).reshape(B, H * W, C)
    )                                                            # [B, HW, C] bf16
    # TODO(synk): fuse this data-dependent gather into the kernel (scalar-prefetch
    # ys/xs, keep the bf16 NHWC image resident in VMEM, assemble (TM, K) rows with
    # pl.ds) — sized to <=16 MiB resident image on v7x; left as XLA glue here.
    patches = jax.vmap(lambda img, ix: jnp.take(img, ix, axis=0))(x_pix, pix_idx)
    patches_flat = patches.reshape(B * N_vis, P * P * C)         # [M, K] bf16

    # ---- hot path: single flattened-M matmul in the Pallas kernel ----
    tokens = _proj_pallas(
        patches_flat, params["w_proj"], params["b_proj"], out_dtype=x.dtype
    )                                                            # [M, D]
    tokens = tokens.reshape(B, N_vis, D)
    return tokens, patch_positions


# --------------------------------- main ------------------------------------ #
if __name__ == "__main__":
    key = jax.random.PRNGKey(0)
    k_x, k_param, k_sample = jax.random.split(key, 3)

    B, C, H, W = 2, 3, 16, 16
    patch_size, embed_dim = 4, 32

    x = jax.random.normal(k_x, (B, C, H, W), dtype=jnp.float32)
    params = init_off_grid_patch_embed(
        k_param, patch_size=patch_size, in_chans=C, embed_dim=embed_dim
    )

    tokens, positions = off_grid_patch_embed_forward(
        params, x, k_sample, mask_ratio=0.0
    )
    tokens = jax.block_until_ready(tokens)
    positions = jax.block_until_ready(positions)

    # pure-JAX f32 reference with the original PyTorch (c, dy, dx) ordering
    N_vis = tokens.shape[1]
    ys, xs = random_sampling(k_sample, B, H, W, patch_size, N_vis)
    dy = jnp.arange(patch_size)[:, None]
    dx = jnp.arange(patch_size)[None, :]
    d = (dy * W + dx).reshape(-1)
    idx = (ys * W + xs)[..., None] + d[None, None, :]
    idx = jnp.broadcast_to(
        idx.reshape(B, 1, -1), (B, C, N_vis * patch_size * patch_size)
    )
    pf = jnp.take_along_axis(x.reshape(B, C, H * W), idx, axis=2)
    pf = pf.reshape(B, C, N_vis, patch_size * patch_size)
    pf = pf.transpose(0, 2, 1, 3).reshape(B, N_vis, -1)
    ref = pf @ params["weight"].T + params["bias"]

    assert tokens.shape == (B, N_vis, embed_dim)
    assert positions.shape == (B, N_vis, 2)
    assert jnp.array_equal(positions, jnp.stack([ys, xs], axis=-1))
    # bf16 streamed operands + f32 accumulation -> loosened tolerance vs f32 ref
    assert jnp.allclose(tokens, ref, atol=2e-2, rtol=2e-2)

    print("KERNEL_OK")
</pallas_src>

<mosaic_0001>
module attributes {stable_mosaic.version = 11 : i64} {
  func.func @_proj_kernel(%arg0: i32, %arg1: memref<16x48xbf16, #tpu.memory_space<vmem>>, %arg2: memref<48x32xbf16, #tpu.memory_space<vmem>>, %arg3: memref<1x32xf32, #tpu.memory_space<vmem>>, %arg4: memref<16x32xf32, #tpu.memory_space<vmem>>) attributes {dimension_semantics = [#tpu.dimension_semantics<parallel>], iteration_bounds = array<i64: 2>, scalar_prefetch = 0 : i64, scratch_operands = 0 : i64, tpu.core_type = #tpu.core_type<tc>, window_params = [{transform_indices = @transform_0, window_bounds = array<i64: 16, 48>}, {pipeline_mode = #tpu.pipeline_mode<synchronous>, transform_indices = @transform_1, window_bounds = array<i64: 48, 32>}, {pipeline_mode = #tpu.pipeline_mode<synchronous>, transform_indices = @transform_2, window_bounds = array<i64: 1, 32>}, {transform_indices = @transform_3, window_bounds = array<i64: 16, 32>}]} {
    %c0 = arith.constant 0 : index
    %c0_0 = arith.constant 0 : index
    %0 = vector.load %arg1[%c0, %c0_0] : memref<16x48xbf16, #tpu.memory_space<vmem>>, vector<16x48xbf16>
    %c0_1 = arith.constant 0 : index
    %c0_2 = arith.constant 0 : index
    %1 = vector.load %arg2[%c0_1, %c0_2] : memref<48x32xbf16, #tpu.memory_space<vmem>>, vector<48x32xbf16>
    %cst = arith.constant dense<0.000000e+00> : vector<16x32xf32>
    %2 = tpu.matmul %0, %1, %cst {dimension_numbers = #tpu.dot_dimension_numbers<[1], [0], [0], [1], [0, 0, 1, 1], [], []>} : vector<16x48xbf16>, vector<48x32xbf16>, vector<16x32xf32> -> vector<16x32xf32>
    %c0_3 = arith.constant 0 : index
    %c0_4 = arith.constant 0 : index
    %3 = vector.load %arg3[%c0_3, %c0_4] : memref<1x32xf32, #tpu.memory_space<vmem>>, vector<1x32xf32>
    %4 = vector.broadcast %3 : vector<1x32xf32> to vector<16x32xf32>
    %5 = arith.addf %2, %4 : vector<16x32xf32>
    %c0_5 = arith.constant 0 : index
    %c0_6 = arith.constant 0 : index
    %6 = vector.load %arg4[%c0_5, %c0_6] : memref<16x32xf32, #tpu.memory_space<vmem>>, vector<16x32xf32>
    tpu.vector_store %arg4[%c0_5, %c0_6], %5 {strides = array<i32>} : memref<16x32xf32, #tpu.memory_space<vmem>>, vector<16x32xf32>,
    return
  }
  func.func @transform_0(%arg0: i32) -> (i32, i32) {
    %c0_i32 = arith.constant 0 : i32
    %c0_i32_0 = arith.constant 0 : i32
    return %arg0, %c0_i32 : i32, i32
  }
  func.func @transform_1(%arg0: i32) -> (i32, i32) {
    %c0_i32 = arith.constant 0 : i32
    %c0_i32_0 = arith.constant 0 : i32
    %c0_i32_1 = arith.constant 0 : i32
    return %c0_i32, %c0_i32_0 : i32, i32
  }
  func.func @transform_2(%arg0: i32) -> (i32, i32) {
    %c0_i32 = arith.constant 0 : i32
    %c0_i32_0 = arith.constant 0 : i32
    %c0_i32_1 = arith.constant 0 : i32
    return %c0_i32, %c0_i32_0 : i32, i32
  }
  func.func @transform_3(%arg0: i32) -> (i32, i32) {
    %c0_i32 = arith.constant 0 : i32
    %c0_i32_0 = arith.constant 0 : i32
    return %arg0, %c0_i32 : i32, i32
  }
}

</mosaic_0001>

<bundles_post_ra>
// kernel: tpu_custom_call.1
= control target key start
LH: loop header
LB: loop body
LE: loop exit
PB: predicated region body
PF: predicated region fallthrough
CT: control target
= control target key end

     0   :  { %8 = vsyncpa [#allocation3], 0  ;;  %s618_s0 = inlined_call_operand.vmem [shape: bf16[32,48], index: 0, kind: input, shape index: {}]   ;;  %s619_s1 = inlined_call_operand.vmem [shape: bf16[48,32], index: 1, kind: input, shape index: {}]   ;;  %s620_s2 = inlined_call_operand.vmem [shape: f32[1,32], index: 2, kind: input, shape index: {}]   ;;  %s621_s3 = inlined_call_operand.hbm [shape: f32[32,32], index: 3, kind: output, shape index: {}]  }
   0x1   :  { %10 = vsyncpa [#allocation3 + $0x1], 0  ;;  %s504_s12 = smov 0   ;;  %s506_s13 = smov 0  }
   0x2   :  { %s508_s14 = smov 0   ;;  %s510_s15 = smov 0  }
   0x3 LB: > { %s525_s16 = sadd.s32 4294967295, %s477_s15   ;;  %s335_s17 = sadd.s32 4294967294, %s477_s15   ;;  %s477_s15 = sphi %s510_s15, %s627_s15   ;;  %s473_s14 = sphi %s508_s14, %s626_s14   ;;  %s469_s13 = sphi %s506_s13, %s625_s13   ;;  %s465_s12 = sphi %s504_s12, %s624_s12  }
   0x4   : > { %s529_s18 = sadd.s32 1, %s477_s15   ;;  %s91_s19 = sadd.s32 1, %s473_s14 }
   0x5   : > { %s88_s20 = ssub.s32 %s477_s15, %s529_s18  ;;  %p101_p0 = scmp.ne.s32.totalorder %s473_s14, %s469_s13 }
   0x6   : > { %p89_p1 = scmp.eq.s32.totalorder %s88_s20, 0  ;;  %p102_p2 = scmp.eq.s32.totalorder %s525_s16, 1 }
   0x7   : > { %p107_p3 = scmp.ne.s32.totalorder %s469_s13, %s465_s12  ;;  %p108_p4 = scmp.eq.s32.totalorder %s335_s17, 1 }
   0x8   : > { %s540_s21 = scalar_select %p89_p1, %s473_s14, %s91_s19  }
   0x9   : > { %p542_p5 = por %p102_p2, %p101_p0  ;;  %p546_p6 = por %p108_p4, %p107_p3 }
   0xa   : > { %p338_p7 = scmp.ge.s32.totalorder %s477_s15, 1  ;;  %p141_p8 = scmp.lt.s32.totalorder %s477_s15, 3 }
   0xc   : > { %p142_p9 = pnand %p338_p7, %p141_p8 }
   0xd   : > { %v411_v0 = vld [vmem:[%s619_s1] sm:$0xff] (!%p142_p9)   ;;  %v479_v1 = vmov (!%p142_p9), 0.0   ;;  %v412_v2 = vld [vmem:[%s619_s1 + $0x8] sm:$0xff] (!%p142_p9)   ;;  %vm480_vm0 = vmmov (!%p142_p9), 0   ;;  %s340_s28 = sshll.u32 (!%p142_p9), %s525_s16, 1  ;;  %v413_v3 = vld [vmem:[%s619_s1 + $0x10] sm:$0xff] (!%p142_p9)  }
   0xe   : > { %145 = sbr.rel (%p142_p9) target bundleno = 257 (0x101), region = 32  ;;  %358 = vmatprep.subr.bf16.mxu0 (!%p142_p9), %v479_v1  ;;  %364 = vmatprep.mubr.msk.bf16.mxu0 (!%p142_p9), %vm480_vm0, %v479_v1  ;;  %p166_p10 = scmp.lt.s32.totalorder (!%p142_p9), %s340_s28, 3  ;;  %vm211_vm1 = vcmask (!%p142_p9), 392192   ;;  %v342_v5 = vld [vmem:[%s620_s2] ss:$0 sm:$0xff] (!%p142_p9)  ;;  %vm256_vm2 = vcmask (!%p142_p9), 261120  }
   0xf   : > { %359 = vmatpush3.bf16.msra.mxu0 (!%p142_p9), %v411_v0  ;;  %s162_s8 = sand.u32 (!%p142_p9), 1, %s469_s13   ;;  %s353_s20 = sshll.u32 (!%p142_p9), %s525_s16, 8 }
  0x10   : > { %360 = vmatprep.subr.bf16.mxu0 (!%p142_p9), %v479_v1  ;;  %s339_s9 = sshll.u32 (!%p142_p9), %s162_s8, 4  ;;  %s575_s26 = scalar_lea.hbm (!%p142_p9), %s621_s3, %s353_s20 }
  0x11   : > { %s164_s17 = scalar_lea.vmem (!%p142_p9), [#allocation2], %s339_s9  ;;  %s577_s16 = scalar_lea.sflag (!%p142_p9), [#allocation3], %s162_s8 }
  0x12   : > { %s273_s19 = sshll.u32 (!%p142_p9), %s164_s17, 4  ;;  %s570_s19 = int_to_ptr.vmem [resolvable:$true] %s273_s19 }
  0x13   : > { %361 = vmatpush3.bf16.msra.mxu0 (!%p142_p9), %v412_v2  ;;  %s415_s27 = scalar_lea.vmem (!%p142_p9), %s570_s19, 256 }
  0x14   : > { %362 = vmatprep.subr.bf16.mxu0 (!%p142_p9), %v479_v1  ;;  %p416_p11 = scmp.ne.s32.totalorder (!%p142_p9), %s570_s19, %s415_s27 }
  0x15   : > { %s629_s28 = smov (!%p166_p10, %s340_s28), 3 }
  0x16   : > { %s341_s4 = sshll.u32 %s629_s28, 2  ;;  %p417_p12 = pnand %p416_p11, %p542_p5 }
  0x17   : > { %s169_s7 = scalar_lea.vmem %s618_s0, %s341_s4  ;;  %363 = vmatpush3.bf16.msra.mxu0 %v413_v3  ;;  %s481_s28 = smov [#allocation2]  }
  0x18   : > { %v414_v4 = vld [vmem:[%s169_s7] sm:$0xff]   ;;  %p418_p13 = pneg %p417_p12  ;;  %s419_s29 = sshll.u32 %s481_s28, 4  ;;  %s420_s29 = int_to_ptr.vmem [resolvable:$false] %s419_s29 }
  0x19   : > { %s421_s30 = scalar_lea.vmem %s420_s29, 512  ;;  %p422_p0 = scmp.lt.s32.totalorder %s570_s19, %s420_s29 }
  0x1a   : > { %365 = vmatmul.mubr.msk.bf16.vlgmr.msra.gmra.mrb[0].mxu0 %vm211_vm1, %v414_v4  ;;  %p423_p1 = scmp.lt.s32.totalorder %s421_s30, %s415_s27 }
  0x1c   : > { %p424_p2 = por %p423_p1, %p422_p0 }
  0x1e   : > { %p425_p3 = pnand %p424_p2, %p418_p13 }
  0xed   : > { %v249_v6 = vpop.f32.mrb[0].mxu0 }
  0xee   : > { %v250_v7 = vadd.f32 %v342_v5, %v249_v6  ;;  %v366_v8 = vpop.f32.mrb[1].mxu0 }
  0xef   : > { %v252_v9 = vpop.f32.mrb[2].mxu0 }
  0xf0   : > { %257 = vst.msk [vmem:[%s164_s17] sm:$0xff] %vm256_vm2, %v250_v7  ;;  %v253_v10 = vadd.f32 %v342_v5, %v252_v9  ;;  %v367_v11 = vpop.f32.mrb[3].mxu0 }
  0xf2   : > { %258 = vst.msk [vmem:[%s164_s17 + $0x8] sm:$0xff] %vm256_vm2, %v253_v10 }
  0xf3   : > { %428 = shalt.err (!%p425_p3)
}
  0xf4   : > { %s429_s4 = scalar_lea.hbm %s575_s26, 256  ;;  %s433_s7 = scalar_lea.hbm %s621_s3, 512 }
  0xf5   : > { %p430_p4 = scmp.ne.s32.totalorder %s575_s26, %s429_s4  ;;  %p434_p9 = scmp.lt.u32.totalorder %s575_s26, %s621_s3 }
  0xf6   : > { %p435_p10 = scmp.lt.u32.totalorder %s433_s7, %s429_s4  ;;  %p437_p12 = scmp.lt.u32.totalorder %s429_s4, %s575_s26 }
  0xf7   : > { %p431_p7 = pnand %p430_p4, %p542_p5 }
  0xf8   : > { %p436_p11 = por %p435_p10, %p434_p9 }
  0xf9   : > { %p432_p8 = pneg %p431_p7 }
  0xfa   : > { %p438_p13 = por %p437_p12, %p436_p11 }
  0xfc   : > { %p439_p0 = pnand %p438_p13, %p432_p8 }
  0xfe   : > { %442 = shalt.err (!%p439_p0)
}
  0xff   : > { %s482_s10 = smov 128   ;;  %s483_s11 = smov 8  }
 0x100   : > { %368 = dma.vmem_to_hbm [thread:$0]  (%p542_p5), %s570_s19, 256, %s575_s26, %s577_s16, %s482_s10, %s482_s10, %s483_s11  }
 0x101 PF: > { %p374_p1 = scmp.ge.s32.totalorder %s477_s15, 2  ;;  %s288_s17 = sand.u32 1, %s465_s12  }
 0x102   : > { %s289_s20 = scalar_lea.sflag [#allocation3], %s288_s17 }
 0x103   : > { %p371_p2 = pnand %p374_p1, %p546_p6 }
 0x105   : > { %460 = dma.done.wait (!%p371_p2), %s289_s20, 256  }
 0x106   : > { %462 = vsyncadd (!%p371_p2), %s289_s20, 4294967040  ;;  %p13_p3 = scmp.ge.s32.totalorder %s529_s18, 4   ;;  %s624_s12 = smov %s469_s13 }
 0x107   : > { %s625_s13 = smov %s473_s14  ;;  %s626_s14 = smov %s540_s21 }
 0x108   : > { %s627_s15 = smov %s529_s18  ;;  %15 = sbr.rel (!%p13_p3) target bundleno = 3 (0x3), region = 67 }
 0x10f   :  { %294 = vsyncpa [#allocation3], 1 }
 0x110   :  { %296 = vsyncpa [#allocation3 + $0x1], 1 }

</bundles_post_ra>
